<compile_context>
chip_gen: v6e
topology: v6e:2x2x1
jax: 0.10.0
libtpu: 0.0.40
codegen_flags: <defaults>
</compile_context>

<pallas_src>
import jax
import jax.numpy as jnp
from jax.experimental import pallas as pl
from jax.experimental.pallas import tpu as pltpu


def _mlp_predict_kernel(feature_ref, bias_ref,
                        w1_ref, b1_ref, w2_ref, b2_ref, w3_ref,
                        out_ref):
    """One batch tile:  relu(x@W1+b1) -> relu(.@W2+b2) -> (. * w3_row).sum(-1) + bias."""
    x = feature_ref[...]                                                    # (TB, D) bf16
    h = jnp.dot(x, w1_ref[...], preferred_element_type=jnp.float32) + b1_ref[...]
    h = jnp.maximum(h, 0.0)                                                 # f32 VPU
    h = jnp.dot(h.astype(w2_ref.dtype), w2_ref[...],
                preferred_element_type=jnp.float32) + b2_ref[...]
    h = jnp.maximum(h, 0.0)
    # Final Linear(D, 1): VPU multiply + lane reduction (avoids an N=1 MXU matmul).
    f = jnp.sum(h * w3_ref[...], axis=-1, keepdims=True)                    # (TB, 1) f32
    # bias_ref already holds b3 + b_user[uid] + b_item[iid] + avg_rating per row.
    out_ref[...] = f + bias_ref[...]


def _round_up(x, m):
    return (x + m - 1) // m * m


def predict_layer(feature, user_id, item_id, params, avg_rating, *, tile_b=512):
    """feature: (B, D) f32, user_id/item_id: (B, 1) i32 -> (B, 1) f32 prediction."""
    B, D = feature.shape

    # --- wrapper-side gather: fold everything row-wise additive into one (B, 1) bias ---
    bias = (params["b_user"][user_id[:, 0]]
            + params["b_item"][item_id[:, 0]]
            + params["b3"].reshape(())
            + jnp.float32(avg_rating)).astype(jnp.float32)[:, None]         # (B, 1)

    # --- operand prep: bf16 for MXU operands, f32 for the VPU epilogue ---
    x = feature.astype(jnp.bfloat16)
    w1 = params["w1"].astype(jnp.bfloat16)                                  # (D, D)
    w2 = params["w2"].astype(jnp.bfloat16)                                  # (D, D)
    b1 = params["b1"].reshape(1, D).astype(jnp.float32)
    b2 = params["b2"].reshape(1, D).astype(jnp.float32)
    w3 = params["w3"].reshape(1, D).astype(jnp.float32)                     # row layout

    # --- batch tiling (tile must be a multiple of 8 sublanes unless it spans the array) ---
    tile_b = min(tile_b, _round_up(B, 8))
    b_pad = _round_up(B, tile_b)
    if b_pad != B:
        x = jnp.pad(x, ((0, b_pad - B), (0, 0)))
        bias = jnp.pad(bias, ((0, b_pad - B), (0, 0)))
    grid = (b_pad // tile_b,)

    def row_spec(shape):       # streamed per batch tile
        return pl.BlockSpec(shape, lambda i: (i, 0))

    def resident(shape):       # stays in VMEM across the whole grid
        return pl.BlockSpec(shape, lambda i: (0, 0))

    out = pl.pallas_call(
        _mlp_predict_kernel,
        out_shape=jax.ShapeDtypeStruct((b_pad, 1), jnp.float32),
        grid=grid,
        in_specs=[
            row_spec((tile_b, D)),     # feature tile (bf16, pipelined)
            row_spec((tile_b, 1)),     # fused bias tile
            resident((D, D)), resident((1, D)),     # w1, b1
            resident((D, D)), resident((1, D)),     # w2, b2
            resident((1, D)),                       # w3 row
        ],
        out_specs=row_spec((tile_b, 1)),
        compiler_params=pltpu.CompilerParams(
            dimension_semantics=("parallel",),      # batch tiles are independent
            vmem_limit_bytes=32 * 1024 * 1024,      # explicit; fits v7x's 64 MiB easily
        ),
    )(x, bias, w1, b1, w2, b2, w3)

    return out[:B]


if __name__ == "__main__":
    # Small config consistent with MrmrpConfig / PredictLayer.__init__
    B = 8
    latent_factors = 8
    D = latent_factors * 3          # MLP input dim = latent_factors * 3
    user_count = 16
    item_count = 16
    avg_rating = 3.5

    key = jax.random.PRNGKey(0)
    ks = jax.random.split(key, 12)

    # Weights stored (in_dim, out_dim) so the kernel computes y = x @ W + b.
    # b_user / b_item match the PyTorch parameter shapes (count,); they are zeros in the
    # PyTorch __init__ but get small random values here so the gather path is exercised.
    params = {
        "w1": 0.1 * jax.random.normal(ks[0], (D, D), jnp.float32),
        "b1": 0.1 * jax.random.normal(ks[1], (1, D), jnp.float32),
        "w2": 0.1 * jax.random.normal(ks[2], (D, D), jnp.float32),
        "b2": 0.1 * jax.random.normal(ks[3], (1, D), jnp.float32),
        "w3": 0.1 * jax.random.normal(ks[4], (D, 1), jnp.float32),
        "b3": 0.1 * jax.random.normal(ks[5], (1, 1), jnp.float32),
        "b_user": 0.1 * jax.random.normal(ks[6], (user_count,), jnp.float32),
        "b_item": 0.1 * jax.random.normal(ks[7], (item_count,), jnp.float32),
    }

    feature = jax.random.normal(ks[8], (B, D), jnp.float32)
    user_id = jax.random.randint(ks[9], (B, 1), 0, user_count, dtype=jnp.int32)
    item_id = jax.random.randint(ks[10], (B, 1), 0, item_count, dtype=jnp.int32)

    out = predict_layer(feature, user_id, item_id, params, avg_rating)
    out = jax.block_until_ready(out)

    # Plain-JAX reference with the same bf16 MXU-operand cast / f32 accumulation.
    fx = feature.astype(jnp.bfloat16)
    w1b = params["w1"].astype(jnp.bfloat16)
    w2b = params["w2"].astype(jnp.bfloat16)
    h = jnp.maximum(jnp.dot(fx, w1b, preferred_element_type=jnp.float32) + params["b1"], 0.0)
    h = jnp.maximum(jnp.dot(h.astype(jnp.bfloat16), w2b,
                            preferred_element_type=jnp.float32) + params["b2"], 0.0)
    f = h @ params["w3"] + params["b3"]
    ref = (f + params["b_user"][user_id[:, 0]][:, None]
             + params["b_item"][item_id[:, 0]][:, None] + avg_rating)

    assert out.shape == (B, 1), out.shape
    assert jnp.allclose(out, ref, atol=1e-4, rtol=1e-4), (out, ref)
    print("KERNEL_OK")
</pallas_src>

<mosaic_0001>
module attributes {stable_mosaic.version = 11 : i64} {
  func.func @_mlp_predict_kernel(%arg0: i32, %arg1: memref<8x24xbf16, #tpu.memory_space<vmem>>, %arg2: memref<8x1xf32, #tpu.memory_space<vmem>>, %arg3: memref<24x24xbf16, #tpu.memory_space<vmem>>, %arg4: memref<1x24xf32, #tpu.memory_space<vmem>>, %arg5: memref<24x24xbf16, #tpu.memory_space<vmem>>, %arg6: memref<1x24xf32, #tpu.memory_space<vmem>>, %arg7: memref<1x24xf32, #tpu.memory_space<vmem>>, %arg8: memref<8x1xf32, #tpu.memory_space<vmem>>) attributes {dimension_semantics = [#tpu.dimension_semantics<parallel>], iteration_bounds = array<i64: 1>, scalar_prefetch = 0 : i64, scratch_operands = 0 : i64, tpu.core_type = #tpu.core_type<tc>, window_params = [{transform_indices = @transform_0, window_bounds = array<i64: 8, 24>}, {transform_indices = @transform_1, window_bounds = array<i64: 8, 1>}, {pipeline_mode = #tpu.pipeline_mode<synchronous>, transform_indices = @transform_2, window_bounds = array<i64: 24, 24>}, {pipeline_mode = #tpu.pipeline_mode<synchronous>, transform_indices = @transform_3, window_bounds = array<i64: 1, 24>}, {pipeline_mode = #tpu.pipeline_mode<synchronous>, transform_indices = @transform_4, window_bounds = array<i64: 24, 24>}, {pipeline_mode = #tpu.pipeline_mode<synchronous>, transform_indices = @transform_5, window_bounds = array<i64: 1, 24>}, {pipeline_mode = #tpu.pipeline_mode<synchronous>, transform_indices = @transform_6, window_bounds = array<i64: 1, 24>}, {transform_indices = @transform_7, window_bounds = array<i64: 8, 1>}]} {
    %c0 = arith.constant 0 : index
    %c0_0 = arith.constant 0 : index
    %0 = vector.load %arg1[%c0, %c0_0] : memref<8x24xbf16, #tpu.memory_space<vmem>>, vector<8x24xbf16>
    %c0_1 = arith.constant 0 : index
    %c0_2 = arith.constant 0 : index
    %1 = vector.load %arg3[%c0_1, %c0_2] : memref<24x24xbf16, #tpu.memory_space<vmem>>, vector<24x24xbf16>
    %cst = arith.constant dense<0.000000e+00> : vector<8x24xf32>
    %2 = tpu.matmul %0, %1, %cst {dimension_numbers = #tpu.dot_dimension_numbers<[1], [0], [0], [1], [0, 0, 1, 1], [], []>} : vector<8x24xbf16>, vector<24x24xbf16>, vector<8x24xf32> -> vector<8x24xf32>
    %c0_3 = arith.constant 0 : index
    %c0_4 = arith.constant 0 : index
    %3 = vector.load %arg4[%c0_3, %c0_4] : memref<1x24xf32, #tpu.memory_space<vmem>>, vector<1x24xf32>
    %4 = vector.broadcast %3 : vector<1x24xf32> to vector<8x24xf32>
    %5 = arith.addf %2, %4 : vector<8x24xf32>
    %cst_5 = arith.constant 0.000000e+00 : f32
    %6 = vector.broadcast %cst_5 : f32 to vector<8x24xf32>
    %7 = arith.maximumf %5, %6 : vector<8x24xf32>
    %8 = arith.truncf %7 : vector<8x24xf32> to vector<8x24xbf16>
    %c0_6 = arith.constant 0 : index
    %c0_7 = arith.constant 0 : index
    %9 = vector.load %arg5[%c0_6, %c0_7] : memref<24x24xbf16, #tpu.memory_space<vmem>>, vector<24x24xbf16>
    %cst_8 = arith.constant dense<0.000000e+00> : vector<8x24xf32>
    %10 = tpu.matmul %8, %9, %cst_8 {dimension_numbers = #tpu.dot_dimension_numbers<[1], [0], [0], [1], [0, 0, 1, 1], [], []>} : vector<8x24xbf16>, vector<24x24xbf16>, vector<8x24xf32> -> vector<8x24xf32>
    %c0_9 = arith.constant 0 : index
    %c0_10 = arith.constant 0 : index
    %11 = vector.load %arg6[%c0_9, %c0_10] : memref<1x24xf32, #tpu.memory_space<vmem>>, vector<1x24xf32>
    %12 = vector.broadcast %11 : vector<1x24xf32> to vector<8x24xf32>
    %13 = arith.addf %10, %12 : vector<8x24xf32>
    %cst_11 = arith.constant 0.000000e+00 : f32
    %14 = vector.broadcast %cst_11 : f32 to vector<8x24xf32>
    %15 = arith.maximumf %13, %14 : vector<8x24xf32>
    %c0_12 = arith.constant 0 : index
    %c0_13 = arith.constant 0 : index
    %16 = vector.load %arg7[%c0_12, %c0_13] : memref<1x24xf32, #tpu.memory_space<vmem>>, vector<1x24xf32>
    %17 = vector.broadcast %16 : vector<1x24xf32> to vector<8x24xf32>
    %18 = arith.mulf %15, %17 : vector<8x24xf32>
    %cst_14 = arith.constant dense<0.000000e+00> : vector<8xf32>
    %19 = vector.multi_reduction <add>, %18, %cst_14 [1] : vector<8x24xf32> to vector<8xf32>
    %20 = vector.shape_cast %19 : vector<8xf32> to vector<8x1xf32>
    %c0_15 = arith.constant 0 : index
    %c0_16 = arith.constant 0 : index
    %21 = vector.load %arg2[%c0_15, %c0_16] : memref<8x1xf32, #tpu.memory_space<vmem>>, vector<8x1xf32>
    %22 = arith.addf %20, %21 : vector<8x1xf32>
    %c0_17 = arith.constant 0 : index
    %c0_18 = arith.constant 0 : index
    %23 = vector.load %arg8[%c0_17, %c0_18] : memref<8x1xf32, #tpu.memory_space<vmem>>, vector<8x1xf32>
    tpu.vector_store %arg8[%c0_17, %c0_18], %22 {strides = array<i32>} : memref<8x1xf32, #tpu.memory_space<vmem>>, vector<8x1xf32>,
    return
  }
  func.func @transform_0(%arg0: i32) -> (i32, i32) {
    %c0_i32 = arith.constant 0 : i32
    %c0_i32_0 = arith.constant 0 : i32
    return %arg0, %c0_i32 : i32, i32
  }
  func.func @transform_1(%arg0: i32) -> (i32, i32) {
    %c0_i32 = arith.constant 0 : i32
    %c0_i32_0 = arith.constant 0 : i32
    return %arg0, %c0_i32 : i32, i32
  }
  func.func @transform_2(%arg0: i32) -> (i32, i32) {
    %c0_i32 = arith.constant 0 : i32
    %c0_i32_0 = arith.constant 0 : i32
    %c0_i32_1 = arith.constant 0 : i32
    return %c0_i32, %c0_i32_0 : i32, i32
  }
  func.func @transform_3(%arg0: i32) -> (i32, i32) {
    %c0_i32 = arith.constant 0 : i32
    %c0_i32_0 = arith.constant 0 : i32
    %c0_i32_1 = arith.constant 0 : i32
    return %c0_i32, %c0_i32_0 : i32, i32
  }
  func.func @transform_4(%arg0: i32) -> (i32, i32) {
    %c0_i32 = arith.constant 0 : i32
    %c0_i32_0 = arith.constant 0 : i32
    %c0_i32_1 = arith.constant 0 : i32
    return %c0_i32, %c0_i32_0 : i32, i32
  }
  func.func @transform_5(%arg0: i32) -> (i32, i32) {
    %c0_i32 = arith.constant 0 : i32
    %c0_i32_0 = arith.constant 0 : i32
    %c0_i32_1 = arith.constant 0 : i32
    return %c0_i32, %c0_i32_0 : i32, i32
  }
  func.func @transform_6(%arg0: i32) -> (i32, i32) {
    %c0_i32 = arith.constant 0 : i32
    %c0_i32_0 = arith.constant 0 : i32
    %c0_i32_1 = arith.constant 0 : i32
    return %c0_i32, %c0_i32_0 : i32, i32
  }
  func.func @transform_7(%arg0: i32) -> (i32, i32) {
    %c0_i32 = arith.constant 0 : i32
    %c0_i32_0 = arith.constant 0 : i32
    return %arg0, %c0_i32 : i32, i32
  }
}

</mosaic_0001>

<bundles_post_ra>
// kernel: tpu_custom_call.1
= control target key start
LH: loop header
LB: loop body
LE: loop exit
PB: predicated region body
PF: predicated region fallthrough
CT: control target
= control target key end

     0   :  { %12 = vsyncpa [#allocation3], 0  ;;  %s371_s0 = inlined_call_operand.hbm [shape: bf16[8,24], index: 0, kind: input, shape index: {}]   ;;  %s372_s1 = inlined_call_operand.vmem [shape: f32[8,1], index: 1, kind: input, shape index: {}]   ;;  %s373_s2 = inlined_call_operand.vmem [shape: bf16[24,24], index: 2, kind: input, shape index: {}]   ;;  %s374_s3 = inlined_call_operand.vmem [shape: f32[1,24], index: 3, kind: input, shape index: {}]   ;;  %s375_s4 = inlined_call_operand.hbm [shape: bf16[24,24], index: 4, kind: input, shape index: {}]   ;;  %s376_s5 = inlined_call_operand.vmem [shape: f32[1,24], index: 5, kind: input, shape index: {}]   ;;  %s377_s6 = inlined_call_operand.vmem [shape: f32[1,24], index: 6, kind: input, shape index: {}]   ;;  %s378_s7 = inlined_call_operand.vmem [shape: f32[8,1], index: 7, kind: output, shape index: {}]  }
   0x1   :  { %13 = vsyncpa [#allocation5], 0  ;;  %s295_s24 = smov [#allocation2]   ;;  %s296_s26 = smov [#allocation4]  }
   0x2   :  { %s20_s25 = sshll.u32 %s295_s24, 4  ;;  %s35_s27 = sshll.u32 %s296_s26, 4  ;;  %s21_s25 = int_to_ptr.vmem [resolvable:$true] %s20_s25  ;;  %s36_s27 = int_to_ptr.vmem [resolvable:$true] %s35_s27 }
   0x3   :  { %s259_s28 = scalar_lea.vmem %s21_s25, 64  ;;  %p264_p1 = scmp.lt.s32.totalorder %s21_s25, %s21_s25 }
   0x4   :  { %p260_p0 = scmp.ne.s32.totalorder %s21_s25, %s259_s28  ;;  %p265_p2 = scmp.lt.s32.totalorder %s259_s28, %s259_s28 }
   0x6   :  { %p266_p3 = por %p265_p2, %p264_p1 }
   0x8   :  { %p267_p4 = pnand %p266_p3, %p260_p0 }
   0xa   :  { %270 = shalt.err (!%p267_p4)
}
   0xb   :  { %23 = dma.hbm_to_vmem [thread:$0]  %s371_s0, 64, %s21_s25, [#allocation3]  }
   0xc   :  { %s279_s8 = scalar_lea.vmem %s36_s27, 192  ;;  %p284_p6 = scmp.lt.s32.totalorder %s36_s27, %s36_s27 }
   0xd   :  { %p280_p5 = scmp.ne.s32.totalorder %s36_s27, %s279_s8  ;;  %p285_p7 = scmp.lt.s32.totalorder %s279_s8, %s279_s8 }
   0xf   :  { %p286_p8 = por %p285_p7, %p284_p6 }
  0x11   :  { %p287_p9 = pnand %p286_p8, %p280_p5 }
  0x13   :  { %290 = shalt.err (!%p287_p9)
}
  0x14   :  { %s297_s9 = smov 64   ;;  %s298_s10 = smov 4  }
  0x15   :  { %41 = dma.hbm_to_vmem [thread:$0]  %s375_s4, 192, %s36_s27, [#allocation5], %s297_s9, %s297_s9, %s298_s10  }
  0x16   :  { %291 = dma.done.wait [#allocation3], 64  }
  0x17   :  { %292 = vsyncadd [#allocation3], 4294967232 }
  0x18   :  { %293 = dma.done.wait [#allocation5], 192  }
  0x19   :  { %294 = vsyncadd [#allocation5], 4294967104  ;;  %v299_v0 = vmov 0.0   ;;  %vm300_vm0 = vmmov 0   ;;  %vm77_vm1 = vcmask 1043456   ;;  %v248_v3 = vld [vmem:[%s373_s2] sm:$0xff]  }
  0x1a   :  { %225 = vmatprep.subr.bf16.mxu0 %v299_v0  ;;  %229 = vmatprep.mubr.msk.bf16.mxu0 %vm300_vm0, %v299_v0  ;;  %v247_v1 = vld [vmem:[%s373_s2 + $0x8] ss:$0 sps:$4 sm:$0xff]   ;;  %v53_v4 = vld [vmem:[#allocation2] sm:$0xf]  ;;  %vm73_vm2 = vcmask 195584   ;;  %vm202_vm3 = vcmask 7168  }
  0x1b   :  { %233 = vmatprep.subr.bf16.mxu1 %v299_v0  ;;  %237 = vmatprep.mubr.msk.bf16.mxu1 %vm300_vm0, %v299_v0  ;;  %v79_v2 = vsel %vm77_vm1, %v247_v1, 0  ;;  %v249_v5 = vld [vmem:[#allocation4 + $0x8] ss:$0 sps:$4 sm:$0xff]   ;;  %v250_v7 = vld [vmem:[#allocation4] sm:$0xff]   ;;  %v210_v8 = vld [vmem:[%s374_s3] ss:$0 sm:$0xff] }
  0x1c   :  { %226 = vmatpush3.bf16.msra.mxu0 %v79_v2  ;;  %v146_v6 = vsel %vm77_vm1, %v249_v5, 0  ;;  %v214_v16 = vld [vmem:[%s376_s5] ss:$0 sm:$0xff] }
  0x1d   :  { %227 = vmatprep.subr.bf16.mxu0 %v299_v0  ;;  %234 = vmatpush3.bf16.msra.mxu1 %v146_v6  ;;  %v218_v20 = vld [vmem:[%s377_s6] ss:$0 sm:$0xff] }
  0x1e   :  { %235 = vmatprep.subr.bf16.mxu1 %v299_v0  ;;  %v200_v26 = vld [vmem:[%s372_s1] sm:$0xff] }
  0x20   :  { %228 = vmatpush3.bf16.msra.mxu0 %v248_v3 }
  0x21   :  { %236 = vmatpush3.bf16.msra.mxu1 %v250_v7 }
  0x23   :  { %230 = vmatmul.mubr.msk.bf16.vlgmr.msra.gmra.mxu0 %vm73_vm2, %v53_v4 }
  0xe3   :  { %v115_v9 = vpop.f32.mrf.mxu0 }
  0xe4   :  { %v116_v10 = vadd.f32 %v210_v8, %v115_v9 }
  0xe5   :  { %v231_v11 = vpop.f32.mrf.mxu0 }
  0xe6   :  { %v121_v12 = vmax.f32 %v116_v10, 0.0 }
  0xe7   :  { %v118_v13 = vpop.f32.mrf.mxu0 }
  0xe8   :  { %v122_v14 = vpack.c.bf16 %v121_v12, %v121_v12 }
  0xe9   :  { %v232_v15 = vpop.f32.mrf.mxu0 }
  0xea   :  { %238 = vmatmul.mubr.msk.bf16.vlgmr.msra.gmra.mxu1 %vm73_vm2, %v122_v14 }
 0x1aa   :  { %v182_v17 = vpop.f32.mrf.mxu1 }
 0x1ab   :  { %v183_v18 = vadd.f32 %v214_v16, %v182_v17 }
 0x1ac   :  { %v239_v19 = vpop.f32.mrf.mxu1 }
 0x1ad   :  { %v188_v21 = vmax.f32 %v183_v18, 0.0 }
 0x1ae   :  { %v185_v22 = vpop.f32.mrf.mxu1 }
 0x1af   :  { %v196_v23 = vmul.f32 %v218_v20, %v188_v21 }
 0x1b0   :  { %v240_v24 = vpop.f32.mrf.mxu1 }
 0x1b1   :  { %v197_v25 = vsel %vm73_vm2, %v196_v23, 0.0 }
 0x1b2   :  { %198 = vadd.xlane.f32.xlu0 %v197_v25 }
 0x23b   :  { %v199_v27 = vpop.xlane.xlu0 %198 }
 0x23c   :  { %v201_v28 = vadd.f32 %v200_v26, %v199_v27 }
 0x23e   :  { %203 = vst.msk [vmem:[%s378_s7] sm:$0xff] %vm202_vm3, %v201_v28 }
 0x23f   :  { %208 = vsyncpa [#allocation3], 1 }
 0x240   :  { %209 = vsyncpa [#allocation5], 1 }

</bundles_post_ra>
